<compile_context>
chip_gen: v6e
topology: v6e:2x2x1
jax: 0.10.0
libtpu: 0.0.40
codegen_flags: <defaults>
</compile_context>

<pallas_src>
import numpy as np

import jax
import jax.numpy as jnp
from jax.experimental import pallas as pl
from jax.experimental.pallas import tpu as pltpu

PATCH = 2          # patch-embedding "conv" kernel & stride
HIDDEN = 32        # backbone.num_channels
MLP_HIDDEN = 128


# ---------------------------------------------------------------------------
# Fused Pallas kernel: patch-embed -> MLP -> residual -> LayerNorm -> levels
# ---------------------------------------------------------------------------
def _fused_backbone_kernel(
    patches_ref,                       # [M, P*P*C]   bf16
    w_patch_ref, b_patch_ref,          # [Kp, D] bf16, [1, D] f32
    w_fc1_ref, b_fc1_ref,              # [D, MH] bf16, [1, MH] f32
    w_fc2_ref, b_fc2_ref,              # [MH, D] bf16, [1, D] f32
    ln_g_ref, ln_b_ref,                # [1, D] f32
    pool1_ref, w_l1_ref, b_l1_ref,     # [M1, M] bf16, [D, D] bf16, [1, D] f32
    pool2_ref, w_l2_ref, b_l2_ref,     # [M2, M1] bf16, [D, D] bf16, [1, D] f32
    src_ref, f1_ref, f2_ref,           # outputs: [M, D], [M1, D], [M2, D] f32
):
    f32 = jnp.float32
    bf16 = jnp.bfloat16

    # --- patch embedding (MXU, bf16 x bf16 -> f32)
    tok = jnp.dot(patches_ref[...], w_patch_ref[...], preferred_element_type=f32)
    tok = tok + b_patch_ref[...]                                   # [M, D] f32

    # --- MLP block (bf16 MXU operands, f32 activation math)
    h = jnp.dot(tok.astype(bf16), w_fc1_ref[...], preferred_element_type=f32)
    # Note: PyTorch nn.GELU defaults to the exact erf form; tanh approx used
    # here for the synthetic backbone (EUP-friendly).
    h = jax.nn.gelu(h + b_fc1_ref[...], approximate=True)          # [M, MH]
    h = jnp.dot(h.astype(bf16), w_fc2_ref[...], preferred_element_type=f32)
    h = h + b_fc2_ref[...]                                         # [M, D]

    # --- residual + LayerNorm (fused, f32)
    x = tok + h
    mu = jnp.mean(x, axis=-1, keepdims=True)
    var = jnp.mean((x - mu) ** 2, axis=-1, keepdims=True)
    tok_ln = (x - mu) * jax.lax.rsqrt(var + 1e-5)
    tok_ln = tok_ln * ln_g_ref[...] + ln_b_ref[...]                # [M, D]
    src_ref[...] = tok_ln.astype(src_ref.dtype)                    # features[0]

    # --- level 1: 2x2 avg pool (constant pooling matmul) + projection
    tok_bf = tok_ln.astype(bf16)
    p1 = jnp.dot(pool1_ref[...], tok_bf, preferred_element_type=f32)      # [M1, D]
    f1 = jnp.dot(p1.astype(bf16), w_l1_ref[...], preferred_element_type=f32)
    f1 = f1 + b_l1_ref[...]
    f1_ref[...] = f1.astype(f1_ref.dtype)                          # features[1]

    # --- level 2: pool again + projection
    p2 = jnp.dot(pool2_ref[...], f1.astype(bf16), preferred_element_type=f32)
    f2 = jnp.dot(p2.astype(bf16), w_l2_ref[...], preferred_element_type=f32)
    f2 = f2 + b_l2_ref[...]
    f2_ref[...] = f2.astype(f2_ref.dtype)                          # features[2]


# ---------------------------------------------------------------------------
# Helpers
# ---------------------------------------------------------------------------
def _make_pool_matrix(B, Hq, Wq):
    """Constant matrix A s.t. A @ x performs 2x2 average pooling over the
    row-major (b, h, w) token axis of x: [B*Hq*Wq, D] -> [B*(Hq//2)*(Wq//2), D]."""
    Ho, Wo = Hq // 2, Wq // 2
    A = np.zeros((B * Ho * Wo, B * Hq * Wq), np.float32)
    r = 0
    for b in range(B):
        for i in range(Ho):
            for j in range(Wo):
                base = b * Hq * Wq + (2 * i) * Wq + 2 * j
                for off in (0, 1, Wq, Wq + 1):
                    A[r, base + off] = 0.25
                r += 1
    return jnp.asarray(A, dtype=jnp.bfloat16)   # 0.25 is exact in bf16


def init_params(key, in_channels):
    """Deterministic synthetic-backbone parameters (no checkpoints)."""
    ks = jax.random.split(key, 5)
    kdim = PATCH * PATCH * in_channels

    def w(kk, shape, fan_in):
        return (jax.random.normal(kk, shape, jnp.float32)
                / jnp.sqrt(fan_in)).astype(jnp.bfloat16)

    return {
        "w_patch": w(ks[0], (kdim, HIDDEN), kdim),
        "b_patch": jnp.zeros((1, HIDDEN), jnp.float32),
        "w_fc1": w(ks[1], (HIDDEN, MLP_HIDDEN), HIDDEN),
        "b_fc1": jnp.zeros((1, MLP_HIDDEN), jnp.float32),
        "w_fc2": w(ks[2], (MLP_HIDDEN, HIDDEN), MLP_HIDDEN),
        "b_fc2": jnp.zeros((1, HIDDEN), jnp.float32),
        "ln_g": jnp.ones((1, HIDDEN), jnp.float32),
        "ln_b": jnp.zeros((1, HIDDEN), jnp.float32),
        "w_l1": w(ks[3], (HIDDEN, HIDDEN), HIDDEN),
        "b_l1": jnp.zeros((1, HIDDEN), jnp.float32),
        "w_l2": w(ks[4], (HIDDEN, HIDDEN), HIDDEN),
        "b_l2": jnp.zeros((1, HIDDEN), jnp.float32),
    }


# ---------------------------------------------------------------------------
# Forward pass (mirrors VisualBackbone.forward semantics)
# ---------------------------------------------------------------------------
def visual_backbone_forward(img_nchw, params, txt_tokens=None):
    B, C, H, W = img_nchw.shape
    P = PATCH
    Hp, Wp = H // P, W // P
    N = Hp * Wp
    M = B * N
    D = HIDDEN

    # Patch extraction (NCHW -> [B*N, P*P*C]) as XLA glue.
    # TODO(synk): at real image sizes fold this strided gather into the kernel's
    # index_map/DMA pattern instead of an HBM->HBM transpose in XLA.
    x = jnp.transpose(img_nchw, (0, 2, 3, 1))                          # NHWC
    patches = (
        x.reshape(B, Hp, P, Wp, P, C)
        .transpose(0, 1, 3, 2, 4, 5)
        .reshape(M, P * P * C)
    ).astype(jnp.bfloat16)

    pool1 = _make_pool_matrix(B, Hp, Wp)            # [M1, M]
    pool2 = _make_pool_matrix(B, Hp // 2, Wp // 2)  # [M2, M1]
    M1, M2 = pool1.shape[0], pool2.shape[0]

    vmem = pl.BlockSpec(memory_space=pltpu.MemorySpace.VMEM)
    src_flat, f1_flat, f2_flat = pl.pallas_call(
        _fused_backbone_kernel,
        out_shape=(
            jax.ShapeDtypeStruct((M, D), jnp.float32),
            jax.ShapeDtypeStruct((M1, D), jnp.float32),
            jax.ShapeDtypeStruct((M2, D), jnp.float32),
        ),
        in_specs=[vmem] * 15,
        out_specs=(vmem, vmem, vmem),
    )(
        patches,
        params["w_patch"], params["b_patch"],
        params["w_fc1"], params["b_fc1"],
        params["w_fc2"], params["b_fc2"],
        params["ln_g"], params["ln_b"],
        pool1, params["w_l1"], params["b_l1"],
        pool2, params["w_l2"], params["b_l2"],
    )

    # features[0]: src [B, N, D], mask [B, Hp, Wp]
    src = src_flat.reshape(B, N, D)
    # TODO(synk): mask is all-False (unpadded synthetic input); real NestedTensor
    # padding semantics are not modeled here.
    mask_flat = jnp.zeros((B, N), dtype=jnp.bool_)       # mask.flatten(1)

    # features[1] / features[2] tensors in NCHW
    feat1 = jnp.transpose(f1_flat.reshape(B, Hp // 2, Wp // 2, D), (0, 3, 1, 2))
    feat2 = jnp.transpose(f2_flat.reshape(B, Hp // 4, Wp // 4, D), (0, 3, 1, 2))

    out1 = jnp.transpose(src, (1, 0, 2))                 # src.permute(1,0,2)
    return [mask_flat, out1, feat1, feat2]


# ---------------------------------------------------------------------------
if __name__ == "__main__":
    key = jax.random.PRNGKey(0)
    k_img, k_par = jax.random.split(key)

    B, C, H, W = 2, 4, 16, 16
    img = jax.random.normal(k_img, (B, C, H, W), jnp.float32)
    params = init_params(k_par, in_channels=C)

    fwd = jax.jit(visual_backbone_forward)
    out = jax.block_until_ready(fwd(img, params))

    # sanity on the contract of VisualBackbone.forward
    N = (H // PATCH) * (W // PATCH)
    assert out[0].shape == (B, N) and out[0].dtype == jnp.bool_
    assert out[1].shape == (N, B, HIDDEN)
    assert out[2].shape == (B, HIDDEN, H // PATCH // 2, W // PATCH // 2)
    assert out[3].shape == (B, HIDDEN, H // PATCH // 4, W // PATCH // 4)
    assert all(bool(jnp.all(jnp.isfinite(o))) for o in out[1:])
    print("KERNEL_OK")
</pallas_src>

<mosaic_0001>
module attributes {stable_mosaic.version = 11 : i64} {
  func.func @_fused_backbone_kernel(%arg0: memref<128x16xbf16, #tpu.memory_space<vmem>>, %arg1: memref<16x32xbf16, #tpu.memory_space<vmem>>, %arg2: memref<1x32xf32, #tpu.memory_space<vmem>>, %arg3: memref<32x128xbf16, #tpu.memory_space<vmem>>, %arg4: memref<1x128xf32, #tpu.memory_space<vmem>>, %arg5: memref<128x32xbf16, #tpu.memory_space<vmem>>, %arg6: memref<1x32xf32, #tpu.memory_space<vmem>>, %arg7: memref<1x32xf32, #tpu.memory_space<vmem>>, %arg8: memref<1x32xf32, #tpu.memory_space<vmem>>, %arg9: memref<32x128xbf16, #tpu.memory_space<vmem>>, %arg10: memref<32x32xbf16, #tpu.memory_space<vmem>>, %arg11: memref<1x32xf32, #tpu.memory_space<vmem>>, %arg12: memref<8x32xbf16, #tpu.memory_space<vmem>>, %arg13: memref<32x32xbf16, #tpu.memory_space<vmem>>, %arg14: memref<1x32xf32, #tpu.memory_space<vmem>>, %arg15: memref<128x32xf32, #tpu.memory_space<vmem>>, %arg16: memref<32x32xf32, #tpu.memory_space<vmem>>, %arg17: memref<8x32xf32, #tpu.memory_space<vmem>>) attributes {dimension_semantics = [], scalar_prefetch = 0 : i64, scratch_operands = 0 : i64, tpu.core_type = #tpu.core_type<tc>} {
    %c0 = arith.constant 0 : index
    %c0_0 = arith.constant 0 : index
    %0 = vector.load %arg0[%c0, %c0_0] : memref<128x16xbf16, #tpu.memory_space<vmem>>, vector<128x16xbf16>
    %c0_1 = arith.constant 0 : index
    %c0_2 = arith.constant 0 : index
    %1 = vector.load %arg1[%c0_1, %c0_2] : memref<16x32xbf16, #tpu.memory_space<vmem>>, vector<16x32xbf16>
    %cst = arith.constant dense<0.000000e+00> : vector<128x32xf32>
    %2 = tpu.matmul %0, %1, %cst {dimension_numbers = #tpu.dot_dimension_numbers<[1], [0], [0], [1], [0, 0, 1, 1], [], []>} : vector<128x16xbf16>, vector<16x32xbf16>, vector<128x32xf32> -> vector<128x32xf32>
    %c0_3 = arith.constant 0 : index
    %c0_4 = arith.constant 0 : index
    %3 = vector.load %arg2[%c0_3, %c0_4] : memref<1x32xf32, #tpu.memory_space<vmem>>, vector<1x32xf32>
    %4 = vector.broadcast %3 : vector<1x32xf32> to vector<128x32xf32>
    %5 = arith.addf %2, %4 : vector<128x32xf32>
    %6 = arith.truncf %5 : vector<128x32xf32> to vector<128x32xbf16>
    %c0_5 = arith.constant 0 : index
    %c0_6 = arith.constant 0 : index
    %7 = vector.load %arg3[%c0_5, %c0_6] : memref<32x128xbf16, #tpu.memory_space<vmem>>, vector<32x128xbf16>
    %cst_7 = arith.constant dense<0.000000e+00> : vector<128x128xf32>
    %8 = tpu.matmul %6, %7, %cst_7 {dimension_numbers = #tpu.dot_dimension_numbers<[1], [0], [0], [1], [0, 0, 1, 1], [], []>} : vector<128x32xbf16>, vector<32x128xbf16>, vector<128x128xf32> -> vector<128x128xf32>
    %c0_8 = arith.constant 0 : index
    %c0_9 = arith.constant 0 : index
    %9 = vector.load %arg4[%c0_8, %c0_9] : memref<1x128xf32, #tpu.memory_space<vmem>>, vector<1x128xf32>
    %10 = vector.broadcast %9 : vector<1x128xf32> to vector<128x128xf32>
    %11 = arith.addf %8, %10 : vector<128x128xf32>
    %12 = arith.mulf %11, %11 : vector<128x128xf32>
    %13 = arith.mulf %11, %12 : vector<128x128xf32>
    %cst_10 = arith.constant 4.471500e-02 : f32
    %14 = vector.broadcast %cst_10 : f32 to vector<128x128xf32>
    %15 = arith.mulf %14, %13 : vector<128x128xf32>
    %16 = arith.addf %11, %15 : vector<128x128xf32>
    %cst_11 = arith.constant 0.797884583 : f32
    %17 = vector.broadcast %cst_11 : f32 to vector<128x128xf32>
    %18 = arith.mulf %17, %16 : vector<128x128xf32>
    %19 = math.tanh %18 : vector<128x128xf32>
    %cst_12 = arith.constant 1.000000e+00 : f32
    %20 = vector.broadcast %cst_12 : f32 to vector<128x128xf32>
    %21 = arith.addf %20, %19 : vector<128x128xf32>
    %cst_13 = arith.constant 5.000000e-01 : f32
    %22 = vector.broadcast %cst_13 : f32 to vector<128x128xf32>
    %23 = arith.mulf %22, %21 : vector<128x128xf32>
    %24 = arith.mulf %11, %23 : vector<128x128xf32>
    %25 = arith.truncf %24 : vector<128x128xf32> to vector<128x128xbf16>
    %c0_14 = arith.constant 0 : index
    %c0_15 = arith.constant 0 : index
    %26 = vector.load %arg5[%c0_14, %c0_15] : memref<128x32xbf16, #tpu.memory_space<vmem>>, vector<128x32xbf16>
    %cst_16 = arith.constant dense<0.000000e+00> : vector<128x32xf32>
    %27 = tpu.matmul %25, %26, %cst_16 {dimension_numbers = #tpu.dot_dimension_numbers<[1], [0], [0], [1], [0, 0, 1, 1], [], []>} : vector<128x128xbf16>, vector<128x32xbf16>, vector<128x32xf32> -> vector<128x32xf32>
    %c0_17 = arith.constant 0 : index
    %c0_18 = arith.constant 0 : index
    %28 = vector.load %arg6[%c0_17, %c0_18] : memref<1x32xf32, #tpu.memory_space<vmem>>, vector<1x32xf32>
    %29 = vector.broadcast %28 : vector<1x32xf32> to vector<128x32xf32>
    %30 = arith.addf %27, %29 : vector<128x32xf32>
    %31 = arith.addf %5, %30 : vector<128x32xf32>
    %cst_19 = arith.constant dense<0.000000e+00> : vector<128xf32>
    %32 = vector.multi_reduction <add>, %31, %cst_19 [1] : vector<128x32xf32> to vector<128xf32>
    %33 = vector.shape_cast %32 : vector<128xf32> to vector<128x1xf32>
    %cst_20 = arith.constant 3.200000e+01 : f32
    %34 = vector.broadcast %cst_20 : f32 to vector<128x1xf32>
    %35 = arith.divf %33, %34 : vector<128x1xf32>
    %36 = vector.broadcast %35 : vector<128x1xf32> to vector<128x32xf32>
    %37 = arith.subf %31, %36 : vector<128x32xf32>
    %38 = arith.mulf %37, %37 : vector<128x32xf32>
    %cst_21 = arith.constant dense<0.000000e+00> : vector<128xf32>
    %39 = vector.multi_reduction <add>, %38, %cst_21 [1] : vector<128x32xf32> to vector<128xf32>
    %40 = vector.shape_cast %39 : vector<128xf32> to vector<128x1xf32>
    %cst_22 = arith.constant 3.200000e+01 : f32
    %41 = vector.broadcast %cst_22 : f32 to vector<128x1xf32>
    %42 = arith.divf %40, %41 : vector<128x1xf32>
    %43 = vector.broadcast %35 : vector<128x1xf32> to vector<128x32xf32>
    %44 = arith.subf %31, %43 : vector<128x32xf32>
    %cst_23 = arith.constant 9.99999974E-6 : f32
    %45 = vector.broadcast %cst_23 : f32 to vector<128x1xf32>
    %46 = arith.addf %42, %45 : vector<128x1xf32>
    %47 = math.rsqrt %46 : vector<128x1xf32>
    %48 = vector.broadcast %47 : vector<128x1xf32> to vector<128x32xf32>
    %49 = arith.mulf %44, %48 : vector<128x32xf32>
    %c0_24 = arith.constant 0 : index
    %c0_25 = arith.constant 0 : index
    %50 = vector.load %arg7[%c0_24, %c0_25] : memref<1x32xf32, #tpu.memory_space<vmem>>, vector<1x32xf32>
    %51 = vector.broadcast %50 : vector<1x32xf32> to vector<128x32xf32>
    %52 = arith.mulf %49, %51 : vector<128x32xf32>
    %c0_26 = arith.constant 0 : index
    %c0_27 = arith.constant 0 : index
    %53 = vector.load %arg8[%c0_26, %c0_27] : memref<1x32xf32, #tpu.memory_space<vmem>>, vector<1x32xf32>
    %54 = vector.broadcast %53 : vector<1x32xf32> to vector<128x32xf32>
    %55 = arith.addf %52, %54 : vector<128x32xf32>
    %c0_28 = arith.constant 0 : index
    %c0_29 = arith.constant 0 : index
    %56 = vector.load %arg15[%c0_28, %c0_29] : memref<128x32xf32, #tpu.memory_space<vmem>>, vector<128x32xf32>
    tpu.vector_store %arg15[%c0_28, %c0_29], %55 {strides = array<i32>} : memref<128x32xf32, #tpu.memory_space<vmem>>, vector<128x32xf32>,
    %57 = arith.truncf %55 : vector<128x32xf32> to vector<128x32xbf16>
    %c0_30 = arith.constant 0 : index
    %c0_31 = arith.constant 0 : index
    %58 = vector.load %arg9[%c0_30, %c0_31] : memref<32x128xbf16, #tpu.memory_space<vmem>>, vector<32x128xbf16>
    %cst_32 = arith.constant dense<0.000000e+00> : vector<32x32xf32>
    %59 = tpu.matmul %58, %57, %cst_32 {dimension_numbers = #tpu.dot_dimension_numbers<[1], [0], [0], [1], [0, 0, 1, 1], [], []>} : vector<32x128xbf16>, vector<128x32xbf16>, vector<32x32xf32> -> vector<32x32xf32>
    %60 = arith.truncf %59 : vector<32x32xf32> to vector<32x32xbf16>
    %c0_33 = arith.constant 0 : index
    %c0_34 = arith.constant 0 : index
    %61 = vector.load %arg10[%c0_33, %c0_34] : memref<32x32xbf16, #tpu.memory_space<vmem>>, vector<32x32xbf16>
    %cst_35 = arith.constant dense<0.000000e+00> : vector<32x32xf32>
    %62 = tpu.matmul %60, %61, %cst_35 {dimension_numbers = #tpu.dot_dimension_numbers<[1], [0], [0], [1], [0, 0, 1, 1], [], []>} : vector<32x32xbf16>, vector<32x32xbf16>, vector<32x32xf32> -> vector<32x32xf32>
    %c0_36 = arith.constant 0 : index
    %c0_37 = arith.constant 0 : index
    %63 = vector.load %arg11[%c0_36, %c0_37] : memref<1x32xf32, #tpu.memory_space<vmem>>, vector<1x32xf32>
    %64 = vector.broadcast %63 : vector<1x32xf32> to vector<32x32xf32>
    %65 = arith.addf %62, %64 : vector<32x32xf32>
    %c0_38 = arith.constant 0 : index
    %c0_39 = arith.constant 0 : index
    %66 = vector.load %arg16[%c0_38, %c0_39] : memref<32x32xf32, #tpu.memory_space<vmem>>, vector<32x32xf32>
    tpu.vector_store %arg16[%c0_38, %c0_39], %65 {strides = array<i32>} : memref<32x32xf32, #tpu.memory_space<vmem>>, vector<32x32xf32>,
    %c0_40 = arith.constant 0 : index
    %c0_41 = arith.constant 0 : index
    %67 = vector.load %arg12[%c0_40, %c0_41] : memref<8x32xbf16, #tpu.memory_space<vmem>>, vector<8x32xbf16>
    %68 = arith.truncf %65 : vector<32x32xf32> to vector<32x32xbf16>
    %cst_42 = arith.constant dense<0.000000e+00> : vector<8x32xf32>
    %69 = tpu.matmul %67, %68, %cst_42 {dimension_numbers = #tpu.dot_dimension_numbers<[1], [0], [0], [1], [0, 0, 1, 1], [], []>} : vector<8x32xbf16>, vector<32x32xbf16>, vector<8x32xf32> -> vector<8x32xf32>
    %70 = arith.truncf %69 : vector<8x32xf32> to vector<8x32xbf16>
    %c0_43 = arith.constant 0 : index
    %c0_44 = arith.constant 0 : index
    %71 = vector.load %arg13[%c0_43, %c0_44] : memref<32x32xbf16, #tpu.memory_space<vmem>>, vector<32x32xbf16>
    %cst_45 = arith.constant dense<0.000000e+00> : vector<8x32xf32>
    %72 = tpu.matmul %70, %71, %cst_45 {dimension_numbers = #tpu.dot_dimension_numbers<[1], [0], [0], [1], [0, 0, 1, 1], [], []>} : vector<8x32xbf16>, vector<32x32xbf16>, vector<8x32xf32> -> vector<8x32xf32>
    %c0_46 = arith.constant 0 : index
    %c0_47 = arith.constant 0 : index
    %73 = vector.load %arg14[%c0_46, %c0_47] : memref<1x32xf32, #tpu.memory_space<vmem>>, vector<1x32xf32>
    %74 = vector.broadcast %73 : vector<1x32xf32> to vector<8x32xf32>
    %75 = arith.addf %72, %74 : vector<8x32xf32>
    %c0_48 = arith.constant 0 : index
    %c0_49 = arith.constant 0 : index
    %76 = vector.load %arg17[%c0_48, %c0_49] : memref<8x32xf32, #tpu.memory_space<vmem>>, vector<8x32xf32>
    tpu.vector_store %arg17[%c0_48, %c0_49], %75 {strides = array<i32>} : memref<8x32xf32, #tpu.memory_space<vmem>>, vector<8x32xf32>,
    return
  }
}

</mosaic_0001>

<bundles_post_ra>
// kernel: visual_backbone_forward.1
= control target key start
LH: loop header
LB: loop body
LE: loop exit
PB: predicated region body
PF: predicated region fallthrough
CT: control target
= control target key end

     0   :  { %s2375_s0 = inlined_call_operand.vmem [shape: bf16[128,16], index: 0, kind: input, shape index: {}]   ;;  %s2376_s1 = inlined_call_operand.vmem [shape: bf16[16,32], index: 1, kind: input, shape index: {}]   ;;  %s2377_s2 = inlined_call_operand.vmem [shape: f32[1,32], index: 2, kind: input, shape index: {}]   ;;  %s2378_s3 = inlined_call_operand.vmem [shape: bf16[32,128], index: 3, kind: input, shape index: {}]   ;;  %s2379_s4 = inlined_call_operand.vmem [shape: f32[1,128], index: 4, kind: input, shape index: {}]   ;;  %s2380_s5 = inlined_call_operand.vmem [shape: bf16[128,32], index: 5, kind: input, shape index: {}]   ;;  %s2381_s6 = inlined_call_operand.vmem [shape: f32[1,32], index: 6, kind: input, shape index: {}]   ;;  %s2382_s7 = inlined_call_operand.vmem [shape: f32[1,32], index: 7, kind: input, shape index: {}]   ;;  %s2383_s8 = inlined_call_operand.vmem [shape: f32[1,32], index: 8, kind: input, shape index: {}]   ;;  %s2384_s9 = inlined_call_operand.vmem [shape: bf16[32,128], index: 9, kind: input, shape index: {}]   ;;  %s2385_s10 = inlined_call_operand.vmem [shape: bf16[32,32], index: 10, kind: input, shape index: {}]   ;;  %s2386_s11 = inlined_call_operand.vmem [shape: f32[1,32], index: 11, kind: input, shape index: {}]   ;;  %s2387_s12 = inlined_call_operand.vmem [shape: bf16[8,32], index: 12, kind: input, shape index: {}]   ;;  %s2388_s13 = inlined_call_operand.vmem [shape: bf16[32,32], index: 13, kind: input, shape index: {}]   ;;  %s2389_s14 = inlined_call_operand.vmem [shape: f32[1,32], index: 14, kind: input, shape index: {}]   ;;  %s2390_s15 = inlined_call_operand.vmem [shape: f32[128,32], index: 15, kind: output, shape index: {0}]   ;;  %s2391_s16 = inlined_call_operand.hbm [shape: f32[32,32], index: 16, kind: output, shape index: {1}]   ;;  %s2392_s17 = inlined_call_operand.hbm [shape: f32[8,32], index: 17, kind: output, shape index: {2}]  }
   0x1   :  { %2394 = sst [smem:[#allocation8_spill]] %s2375_s0 }
   0x2   :  { %2395 = sst [smem:[#allocation9_spill]] %s2376_s1 }
   0x3   :  { %23 = vsyncpa [#allocation3], 0  ;;  %s2396_s26 = sld [smem:[#allocation9_spill]]  ;;  %vm127_vm0 = vcmask 130048  }
   0x4   :  { %s2397_s29 = sld [smem:[#allocation8_spill]] }
   0x9   :  { %v1541_v0 = vld [vmem:[%s2396_s26] sm:$0xff]  }
   0xa   :  { %v1542_v1 = vld [vmem:[%s2397_s29] sm:$0xff]   ;;  %1421 = vmatprep.subr.bf16.mxu0 %v1541_v0  ;;  %v1543_v2 = vld [vmem:[%s2397_s29 + $0x8] sm:$0xff]   ;;  %v1544_v3 = vld [vmem:[%s2397_s29 + $0x10] sm:$0xff]  }
   0xb   :  { %1422 = vmatpush3.bf16.msra.mxu0 %v1541_v0  ;;  %1423 = vmatprep.mubr.msk.bf16.mxu0 %vm127_vm0, %v1542_v1  ;;  %v1545_v4 = vld [vmem:[%s2397_s29 + $0x18] sm:$0xff]   ;;  %v1546_v5 = vld [vmem:[%s2397_s29 + $0x20] sm:$0xff]   ;;  %v1547_v6 = vld [vmem:[%s2397_s29 + $0x28] sm:$0xff]  }
   0xc   :  { %v1548_v7 = vld [vmem:[%s2397_s29 + $0x30] sm:$0xff]  }
   0xe   :  { %1424 = vmatmul.mubr.msk.bf16.vlgmr.msra.gmra.mxu0 %vm127_vm0, %v1543_v2 }
   0xf   :  { %1427 = vmatprep.mubr.msk.bf16.mxu0 %vm127_vm0, %v1544_v3 }
  0x16   :  { %1428 = vmatmul.mubr.msk.bf16.gmra.mxu0 %vm127_vm0, %v1545_v4 }
  0x17   :  { %1431 = vmatprep.mubr.msk.bf16.mxu0 %vm127_vm0, %v1546_v5 }
  0x18   :  { %24 = vsyncpa [#allocation5], 0  ;;  %v1549_v8 = vld [vmem:[%s2397_s29 + $0x38] sm:$0xff]   ;;  %v1550_v9 = vld [vmem:[%s2378_s3 + $0x8] sm:$0xff]   ;;  %vm280_vm1 = vcmask 261120   ;;  %vm1675_vm2 = vmmov 0  }
  0x19   :  { %1439 = vmatprep.subr.bf16.mxu1 %v1550_v9  ;;  %v1551_v10 = vld [vmem:[%s2378_s3] sm:$0xff]   ;;  %v1552_v52 = vld [vmem:[%s2380_s5 + $0x38] sm:$0xff]   ;;  %v1553_v53 = vld [vmem:[%s2380_s5 + $0x30] sm:$0xff]  }
  0x1a   :  { %1440 = vmatpush3.bf16.msra.mxu1 %v1550_v9  ;;  %v1314_v14 = vld [vmem:[%s2377_s2] ss:$0 sm:$0xff]  ;;  %1459 = vmatprep.subr.bf16.mxu0 %v1552_v52  ;;  %v1554_v54 = vld [vmem:[%s2380_s5 + $0x28] sm:$0xff]   ;;  %v1556_v56 = vld [vmem:[%s2380_s5 + $0x18] sm:$0xff]  }
  0x1b   :  { %1441 = vmatprep.subr.bf16.mxu1 %v1551_v10  ;;  %1460 = vmatpush3.bf16.msra.mxu0 %v1552_v52  ;;  %v1555_v55 = vld [vmem:[%s2380_s5 + $0x20] sm:$0xff]   ;;  %v1557_v57 = vld [vmem:[%s2380_s5 + $0x10] sm:$0xff]   ;;  %v1558_v58 = vld [vmem:[%s2380_s5 + $0x8] sm:$0xff]  }
  0x1c   :  { %1461 = vmatprep.subr.bf16.mxu0 %v1553_v53  ;;  %v1559_v59 = vld [vmem:[%s2380_s5] sm:$0xff]  }
  0x1d   :  { %v1897_v60 = vld [vmem:[%s2379_s4] ss:$0 sm:$0xff] }
  0x1e   :  { %1432 = vmatmul.mubr.msk.bf16.gmra.mxu0 %vm127_vm0, %v1547_v6  ;;  %1442 = vmatpush3.bf16.msra.mxu1 %v1551_v10 }
  0x1f   :  { %1435 = vmatprep.mubr.msk.bf16.mxu0 %vm127_vm0, %v1548_v7  ;;  %1462 = vmatpush3.bf16.msra.mxu0 %v1553_v53 }
  0x20   :  { %1463 = vmatprep.subr.bf16.mxu0 %v1554_v54 }
  0x23   :  { %1464 = vmatpush3.bf16.msra.mxu0 %v1554_v54 }
  0x24   :  { %1465 = vmatprep.subr.bf16.mxu0 %v1555_v55 }
  0x26   :  { %1436 = vmatmul.mubr.msk.bf16.gmra.mxu0 %vm127_vm0, %v1549_v8 }
  0x27   :  { %1466 = vmatpush3.bf16.msra.mxu0 %v1555_v55 }
  0x28   :  { %1467 = vmatprep.subr.bf16.mxu0 %v1556_v56 }
  0x2b   :  { %1468 = vmatpush3.bf16.msra.mxu0 %v1556_v56 }
  0x2c   :  { %1469 = vmatprep.subr.bf16.mxu0 %v1557_v57 }
  0x2f   :  { %1470 = vmatpush3.bf16.msra.mxu0 %v1557_v57 }
  0x30   :  { %1471 = vmatprep.subr.bf16.mxu0 %v1558_v58 }
  0x33   :  { %1472 = vmatpush3.bf16.msra.mxu0 %v1558_v58 }
  0x34   :  { %1473 = vmatprep.subr.bf16.mxu0 %v1559_v59 }
  0x37   :  { %1474 = vmatpush3.bf16.msra.mxu0 %v1559_v59 }
  0xce   :  { %v1425_v11 = vpop.f32.mrf.mxu0 }
  0xcf   :  { %v1820_v19 = vadd.f32 %v1425_v11, %v1314_v14 }
  0xd0   :  { %v186_v12 = vpop.f32.mrf.mxu0 }
  0xd1   :  { %v1816_v17 = vadd.f32 %v1314_v14, %v186_v12 }
  0xd2   :  { %v1426_v13 = vpop.f32.mrf.mxu0 }
  0xd3   :  { %v1814_v15 = vadd.f32 %v1426_v13, %v1314_v14 }
  0xd4   :  { %v189_v16 = vpop.f32.mrf.mxu0 }
  0xd5   :  { %v1818_v18 = vadd.f32 %v1314_v14, %v189_v16  ;;  %v250_v22 = vpack.c.bf16 %v1814_v15, %v1820_v19 }
  0xd6   :  { %v1429_v20 = vpop.f32.mrf.mxu0 }
  0xd7   :  { %v249_v21 = vpack.c.bf16 %v1818_v18, %v1816_v17  ;;  %v1834_v29 = vadd.f32 %v1429_v20, %v1314_v14 }
  0xd8   :  { %v202_v23 = vpop.f32.mrf.mxu0 }
  0xd9   :  { %1443 = vmatprep.mubr.msk.bf16.mxu1 %vm280_vm1, %v249_v21  ;;  %v1830_v27 = vadd.f32 %v1314_v14, %v202_v23 }
  0xda   :  { %v1430_v24 = vpop.f32.mrf.mxu0  ;;  %1444 = vmatmul.mubr.msk.bf16.vlgmr.msra.gmra.mxu1 %vm280_vm1, %v250_v22 }
  0xdb   :  { %v1828_v25 = vadd.f32 %v1430_v24, %v1314_v14 }
  0xdc   :  { %v205_v26 = vpop.f32.mrf.mxu0 }
  0xdd   :  { %v1832_v28 = vadd.f32 %v1314_v14, %v205_v26  ;;  %v252_v32 = vpack.c.bf16 %v1828_v25, %v1834_v29 }
  0xde   :  { %v1433_v30 = vpop.f32.mrf.mxu0 }
  0xdf   :  { %v251_v31 = vpack.c.bf16 %v1832_v28, %v1830_v27  ;;  %v1848_v39 = vadd.f32 %v1433_v30, %v1314_v14 }
  0xe0   :  { %v218_v33 = vpop.f32.mrf.mxu0 }
  0xe1   :  { %1447 = vmatprep.mubr.msk.bf16.mxu1 %vm280_vm1, %v251_v31  ;;  %v1844_v37 = vadd.f32 %v1314_v14, %v218_v33 }
  0xe2   :  { %v1434_v34 = vpop.f32.mrf.mxu0  ;;  %1448 = vmatmul.mubr.msk.bf16.gmra.mxu1 %vm280_vm1, %v252_v32 }
  0xe3   :  { %v1842_v35 = vadd.f32 %v1434_v34, %v1314_v14 }
  0xe4   :  { %v221_v36 = vpop.f32.mrf.mxu0 }
  0xe5   :  { %v1846_v38 = vadd.f32 %v1314_v14, %v221_v36  ;;  %v254_v42 = vpack.c.bf16 %v1842_v35, %v1848_v39 }
  0xe6   :  { %v1437_v40 = vpop.f32.mrf.mxu0 }
  0xe7   :  { %v253_v41 = vpack.c.bf16 %v1846_v38, %v1844_v37  ;;  %v1862_v49 = vadd.f32 %v1437_v40, %v1314_v14 }
  0xe8   :  { %v234_v43 = vpop.f32.mrf.mxu0 }
  0xe9   :  { %1451 = vmatprep.mubr.msk.bf16.mxu1 %vm280_vm1, %v253_v41  ;;  %v1858_v47 = vadd.f32 %v1314_v14, %v234_v43 }
  0xea   :  { %v1438_v44 = vpop.f32.mrf.mxu0  ;;  %1452 = vmatmul.mubr.msk.bf16.gmra.mxu1 %vm280_vm1, %v254_v42 }
  0xeb   :  { %v1856_v45 = vadd.f32 %v1438_v44, %v1314_v14 }
  0xec   :  { %v237_v46 = vpop.f32.mrf.mxu0 }
  0xed   :  { %v1860_v48 = vadd.f32 %v1314_v14, %v237_v46  ;;  %v256_v51 = vpack.c.bf16 %v1856_v45, %v1862_v49 }
  0xef   :  { %v255_v50 = vpack.c.bf16 %v1860_v48, %v1858_v47 }
  0xf1   :  { %1455 = vmatprep.mubr.msk.bf16.mxu1 %vm280_vm1, %v255_v50 }
  0xf2   :  { %1456 = vmatmul.mubr.msk.bf16.gmra.mxu1 %vm280_vm1, %v256_v51 }
 0x19a   :  { %v1445_v61 = vpop.f32.mrf.mxu1 }
 0x19b   :  { %v1900_v62 = vadd.f32 %v1445_v61, %v1897_v60 }
 0x19c   :  { %v339_v63 = vpop.f32.mrf.mxu1 }
 0x19d   :  { %v404_v0 = vmul.f32 %v1900_v62, %v1900_v62  ;;  %v1905_v1 = vadd.f32 %v1897_v60, %v339_v63 }
 0x19e   :  { %v1446_v2 = vpop.f32.mrf.mxu1 }
 0x19f   :  { %v420_v3 = vmul.f32 %v404_v0, %v1900_v62  ;;  %v402_v4 = vmul.f32 %v1905_v1, %v1905_v1  ;;  %v1911_v5 = vadd.f32 %v1446_v2, %v1897_v60 }
 0x1a0   :  { %v342_v6 = vpop.f32.mrf.mxu1 }
 0x1a1   :  { %v436_v7 = vmul.f32 0.044715, %v420_v3  ;;  %v418_v8 = vmul.f32 %v402_v4, %v1905_v1  ;;  %v405_v9 = vmul.f32 %v1911_v5, %v1911_v5  ;;  %v1917_v10 = vadd.f32 %v1897_v60, %v342_v6 }
 0x1a2   :  { %v1449_v11 = vpop.f32.mrf.mxu1 }
 0x1a3   :  { %v452_v12 = vadd.f32 %v436_v7, %v1900_v62  ;;  %v434_v13 = vmul.f32 0.044715, %v418_v8  ;;  %v421_v14 = vmul.f32 %v405_v9, %v1911_v5  ;;  %v403_v16 = vmul.f32 %v1917_v10, %v1917_v10 }
 0x1a4   :  { %v1924_v20 = vadd.f32 %v1449_v11, %v1897_v60  ;;  %v355_v21 = vpop.f32.mrf.mxu1 }
 0x1a5   :  { %v468_v22 = vmul.f32 0.7978846, %v452_v12  ;;  %v450_v23 = vadd.f32 %v434_v13, %v1905_v1  ;;  %v437_v24 = vmul.f32 0.044715, %v421_v14  ;;  %v419_v26 = vmul.f32 %v403_v16, %v1917_v10 }
 0x1a6   :  { %v408_v30 = vmul.f32 %v1924_v20, %v1924_v20  ;;  %v1931_v31 = vadd.f32 %v1897_v60, %v355_v21  ;;  %v1450_v32 = vpop.f32.mrf.mxu1 }
 0x1a7   :  { %1566 = vtanh.f32 %v468_v22  ;;  %v466_v33 = vmul.f32 0.7978846, %v450_v23  ;;  %v453_v34 = vadd.f32 %v437_v24, %v1911_v5  ;;  %v435_v36 = vmul.f32 0.044715, %v419_v26 }
 0x1a8   :  { %v424_v40 = vmul.f32 %v408_v30, %v1924_v20  ;;  %v406_v41 = vmul.f32 %v1931_v31, %v1931_v31  ;;  %v1938_v42 = vadd.f32 %v1450_v32, %v1897_v60  ;;  %v358_v43 = vpop.f32.mrf.mxu1 }
 0x1a9   :  { %v469_v44 = vmul.f32 0.7978846, %v453_v34  ;;  %v451_v46 = vadd.f32 %v435_v36, %v1917_v10  ;;  %v1942_v50 = vadd.f32 %v1897_v60, %v358_v43  ;;  %1568 = vtanh.f32 %v466_v33 }
 0x1aa   :  { %v440_v51 = vmul.f32 0.044715, %v424_v40  ;;  %v422_v52 = vmul.f32 %v406_v41, %v1931_v31  ;;  %v409_v53 = vmul.f32 %v1938_v42, %v1938_v42  ;;  %v1453_v54 = vpop.f32.mrf.mxu1 }
 0x1ab   :  { %1570 = vtanh.f32 %v469_v44  ;;  %v467_v55 = vmul.f32 0.7978846, %v451_v46  ;;  %v407_v56 = vmul.f32 %v1942_v50, %v1942_v50  ;;  %v1950_v57 = vadd.f32 %v1453_v54, %v1897_v60 }
 0x1ac   :  { %v456_v58 = vadd.f32 %v440_v51, %v1924_v20  ;;  %v438_v59 = vmul.f32 0.044715, %v422_v52  ;;  %v425_v61 = vmul.f32 %v409_v53, %v1938_v42  ;;  %v371_v63 = vpop.f32.mrf.mxu1 }
 0x1ad   :  { %1572 = vtanh.f32 %v467_v55  ;;  %v423_v0 = vmul.f32 %v407_v56, %v1942_v50  ;;  %v412_v2 = vmul.f32 %v1950_v57, %v1950_v57  ;;  %v1958_v3 = vadd.f32 %v1897_v60, %v371_v63 }
 0x1ae   :  { %v472_v4 = vmul.f32 0.7978846, %v456_v58  ;;  %v454_v6 = vadd.f32 %v438_v59, %v1931_v31  ;;  %v441_v7 = vmul.f32 0.044715, %v425_v61  ;;  %v1454_v8 = vpop.f32.mrf.mxu1 }
 0x1af   :  { %v439_v9 = vmul.f32 0.044715, %v423_v0  ;;  %v428_v11 = vmul.f32 %v412_v2, %v1950_v57  ;;  %v410_v12 = vmul.f32 %v1958_v3, %v1958_v3  ;;  %v1965_v13 = vadd.f32 %v1454_v8, %v1897_v60 }
 0x1b0   :  { %1574 = vtanh.f32 %v472_v4  ;;  %v470_v14 = vmul.f32 0.7978846, %v454_v6  ;;  %v457_v16 = vadd.f32 %v441_v7, %v1938_v42  ;;  %v374_v21 = vpop.f32.mrf.mxu1 }
 0x1b1   :  { %v455_v22 = vadd.f32 %v439_v9, %v1942_v50  ;;  %v444_v23 = vmul.f32 0.044715, %v428_v11  ;;  %v426_v24 = vmul.f32 %v410_v12, %v1958_v3  ;;  %v413_v26 = vmul.f32 %v1965_v13, %v1965_v13 }
 0x1b2   :  { %1576 = vtanh.f32 %v470_v14  ;;  %v473_v30 = vmul.f32 0.7978846, %v457_v16  ;;  %v1973_v32 = vadd.f32 %v1897_v60, %v374_v21  ;;  %v1457_v33 = vpop.f32.mrf.mxu1 }
 0x1b3   :  { %v471_v34 = vmul.f32 0.7978846, %v455_v22  ;;  %v460_v36 = vadd.f32 %v444_v23, %v1950_v57  ;;  %v442_v40 = vmul.f32 0.044715, %v426_v24  ;;  %v429_v41 = vmul.f32 %v413_v26, %v1965_v13 }
 0x1b4   :  { %v1567_v43 = vpop.eup %1566  ;;  %1578 = vtanh.f32 %v473_v30  ;;  %v411_v44 = vmul.f32 %v1973_v32, %v1973_v32  ;;  %v1980_v46 = vadd.f32 %v1457_v33, %v1897_v60  ;;  %v387_v51 = vpop.f32.mrf.mxu1 }
 0x1b5   :  { %v500_v52 = vadd.f32 1.0, %v1567_v43  ;;  %1580 = vtanh.f32 %v471_v34  ;;  %v476_v53 = vmul.f32 0.7978846, %v460_v36  ;;  %v458_v54 = vadd.f32 %v442_v40, %v1958_v3 }
 0x1b6   :  { %v445_v55 = vmul.f32 0.044715, %v429_v41  ;;  %v427_v56 = vmul.f32 %v411_v44, %v1973_v32  ;;  %v416_v58 = vmul.f32 %v1980_v46, %v1980_v46  ;;  %v1987_v59 = vadd.f32 %v1897_v60, %v387_v51  ;;  %v1458_v61 = vpop.f32.mrf.mxu1  ;;  %v1569_v63 = vpop.eup %1568 }
 0x1b7   :  { %1582 = vtanh.f32 %v476_v53  ;;  %v474_v0 = vmul.f32 0.7978846, %v458_v54  ;;  %v1990_v2 = vadd.f32 %v1458_v61, %v1897_v60  ;;  %v516_v12 = vmul.f32 0.5, %v500_v52 }
 0x1b8   :  { %v1571_v4 = vpop.eup %1570  ;;  %v461_v6 = vadd.f32 %v445_v55, %v1965_v13  ;;  %v443_v7 = vmul.f32 0.044715, %v427_v56  ;;  %v432_v8 = vmul.f32 %v416_v58, %v1980_v46  ;;  %v414_v9 = vmul.f32 %v1987_v59, %v1987_v59  ;;  %v390_v11 = vpop.f32.mrf.mxu1 }
 0x1b9   :  { %v501_v14 = vadd.f32 1.0, %v1571_v4  ;;  %1584 = vtanh.f32 %v474_v0  ;;  %v417_v16 = vmul.f32 %v1990_v2, %v1990_v2  ;;  %v2002_v34 = vadd.f32 %v1897_v60, %v390_v11 }
 0x1ba   :  { %v1573_v21 = vpop.eup %1572  ;;  %v477_v22 = vmul.f32 0.7978846, %v461_v6  ;;  %v459_v23 = vadd.f32 %v443_v7, %v1973_v32  ;;  %v448_v24 = vmul.f32 0.044715, %v432_v8  ;;  %v430_v26 = vmul.f32 %v414_v9, %v1987_v59 }
 0x1bb   :  { %v517_v30 = vmul.f32 0.5, %v501_v14  ;;  %v433_v33 = vmul.f32 %v417_v16, %v1990_v2  ;;  %v498_v36 = vadd.f32 1.0, %v1569_v63  ;;  %v415_v52 = vmul.f32 %v2002_v34, %v2002_v34 }
 0x1bc   :  { %1586 = vtanh.f32 %v477_v22  ;;  %v475_v40 = vmul.f32 0.7978846, %v459_v23  ;;  %v464_v41 = vadd.f32 %v448_v24, %v1980_v46  ;;  %v446_v43 = vmul.f32 0.044715, %v430_v26 }
 0x1bd   :  { %v1575_v44 = vpop.eup %1574  ;;  %v449_v51 = vmul.f32 0.044715, %v433_v33  ;;  %v499_v53 = vadd.f32 1.0, %v1573_v21  ;;  %v514_v56 = vmul.f32 0.5, %v498_v36  ;;  %v532_v60 = vmul.f32 %v516_v12, %v1900_v62 }
 0x1be   :  { %1588 = vtanh.f32 %v475_v40  ;;  %v480_v54 = vmul.f32 0.7978846, %v464_v41  ;;  %v462_v55 = vadd.f32 %v446_v43, %v1987_v59  ;;  %v431_v63 = vmul.f32 %v415_v52, %v2002_v34 }
 0x1bf   :  { %v1577_v58 = vpop.eup %1576  ;;  %v465_v61 = vadd.f32 %v449_v51, %v1990_v2  ;;  %v515_v0 = vmul.f32 0.5, %v499_v53  ;;  %v533_v4 = vmul.f32 %v517_v30, %v1911_v5  ;;  %v530_v14 = vmul.f32 %v514_v56, %v1905_v1 }
 0x1c0   :  { %1590 = vtanh.f32 %v480_v54  ;;  %v478_v6 = vmul.f32 0.7978846, %v462_v55  ;;  %v502_v7 = vadd.f32 1.0, %v1577_v58  ;;  %v447_v11 = vmul.f32 0.044715, %v431_v63 }
 0x1c1   :  { %v1579_v8 = vpop.eup %1578  ;;  %v481_v9 = vmul.f32 0.7978846, %v465_v61  ;;  %v531_v16 = vmul.f32 %v515_v0, %v1917_v10  ;;  %v504_v12 = vadd.f32 1.0, %v1575_v44  ;;  %v547_v30 = vpack.c.bf16 %v533_v4, %v532_v60 }
 0x1c2   :  { %v1581_v21 = vpop.eup %1580  ;;  %1592 = vtanh.f32 %v478_v6  ;;  %v518_v62 = vmul.f32 0.5, %v502_v7  ;;  %v505_v22 = vadd.f32 1.0, %v1579_v8  ;;  %v463_v23 = vadd.f32 %v447_v11, %v2002_v34 }
 0x1c3   :  { %1594 = vtanh.f32 %v481_v9  ;;  %v546_v24 = vpack.c.bf16 %v531_v16, %v530_v14  ;;  %v503_v5 = vadd.f32 1.0, %v1581_v21  ;;  %v520_v1 = vmul.f32 0.5, %v504_v12 }
 0x1c4   :  { %v1583_v26 = vpop.eup %1582  ;;  %v521_v33 = vmul.f32 0.5, %v505_v22  ;;  %v479_v36 = vmul.f32 0.7978846, %v463_v23  ;;  %v534_v10 = vmul.f32 %v518_v62, %v1931_v31 }
 0x1c5   :  { %1475 = vmatprep.mubr.bf16.mxu0 %v546_v24  ;;  %v519_v40 = vmul.f32 0.5, %v503_v5  ;;  %v536_v54 = vmul.f32 %v520_v1, %v1924_v20  ;;  %v508_v55 = vadd.f32 1.0, %v1583_v26 }
 0x1c6   :  { %v1585_v41 = vpop.eup %1584  ;;  %1476 = vmatmul.mubr.bf16.vlgmr.msra.gmra.mxu0 %v547_v30  ;;  %1596 = vtanh.f32 %v479_v36  ;;  %v537_v44 = vmul.f32 %v521_v33, %v1938_v42 }
 0x1c7   :  { %v535_v43 = vmul.f32 %v519_v40, %v1942_v50  ;;  %v506_v51 = vadd.f32 1.0, %v1585_v41  ;;  %v524_v6 = vmul.f32 0.5, %v508_v55 }
 0x1c8   :  { %v549_v60 = vpack.c.bf16 %v537_v44, %v536_v54 }
 0x1c9   :  { %v1587_v52 = vpop.eup %1586  ;;  %v548_v53 = vpack.c.bf16 %v535_v43, %v534_v10  ;;  %v522_v63 = vmul.f32 0.5, %v506_v51  ;;  %v540_v16 = vmul.f32 %v524_v6, %v1950_v57 }
 0x1ca   :  { %v509_v56 = vadd.f32 1.0, %v1587_v52 }
 0x1cb   :  { %v1589_v58 = vpop.eup %1588  ;;  %1479 = vmatprep.mubr.bf16.mxu0 %v548_v53  ;;  %v538_v42 = vmul.f32 %v522_v63, %v1958_v3 }
 0x1cc   :  { %v507_v61 = vadd.f32 1.0, %v1589_v58  ;;  %v525_v0 = vmul.f32 0.5, %v509_v56 }
 0x1cd   :  { %v1591_v4 = vpop.eup %1590 }
 0x1ce   :  { %1480 = vmatmul.mubr.bf16.gmra.mxu0 %v549_v60  ;;  %v523_v31 = vmul.f32 0.5, %v507_v61  ;;  %v541_v20 = vmul.f32 %v525_v0, %v1965_v13  ;;  %v512_v21 = vadd.f32 1.0, %v1591_v4 }
 0x1cf   :  { %v1593_v50 = vpop.eup %1592 }
 0x1d0   :  { %v1595_v7 = vpop.eup %1594  ;;  %v539_v8 = vmul.f32 %v523_v31, %v1973_v32  ;;  %v510_v9 = vadd.f32 1.0, %v1593_v50  ;;  %v551_v12 = vpack.c.bf16 %v541_v20, %v540_v16  ;;  %v528_v5 = vmul.f32 0.5, %v512_v21 }
 0x1d1   :  { %v513_v11 = vadd.f32 1.0, %v1595_v7 }
 0x1d2   :  { %v550_v14 = vpack.c.bf16 %v539_v8, %v538_v42  ;;  %v526_v24 = vmul.f32 0.5, %v510_v9  ;;  %v544_v30 = vmul.f32 %v528_v5, %v1980_v46  ;;  %v1343_v46 = vld [vmem:[%s2381_s6] ss:$0 sm:$0xff] }
 0x1d3   :  { %v1597_v62 = vpop.eup %1596  ;;  %v529_v22 = vmul.f32 0.5, %v513_v11 }
 0x1d4   :  { %1483 = vmatprep.mubr.bf16.mxu0 %v550_v14  ;;  %v511_v23 = vadd.f32 1.0, %v1597_v62  ;;  %v542_v32 = vmul.f32 %v526_v24, %v1987_v59 }
 0x1d5   :  { %v545_v3 = vmul.f32 %v529_v22, %v1990_v2 }
 0x1d6   :  { %1484 = vmatmul.mubr.bf16.gmra.mxu0 %v551_v12  ;;  %v527_v26 = vmul.f32 0.5, %v511_v23 }
 0x1d7   :  { %v553_v57 = vpack.c.bf16 %v545_v3, %v544_v30 }
 0x1d8   :  { %v543_v13 = vmul.f32 %v527_v26, %v2002_v34 }
 0x1da   :  { %v552_v33 = vpack.c.bf16 %v543_v13, %v542_v32 }
 0x1dc   :  { %1487 = vmatprep.mubr.bf16.mxu0 %v552_v33 }
 0x1de   :  { %1488 = vmatmul.mubr.bf16.gmra.mxu0 %v553_v57 }
 0x286   :  { %v1477_v36 = vpop.f32.mrf.mxu0 }
 0x287   :  { %v668_v5 = vadd.f32 %v1477_v36, %v1343_v46 }
 0x288   :  { %v659_v40 = vpop.f32.mrf.mxu0 }
 0x289   :  { %v660_v13 = vadd.f32 %v1343_v46, %v659_v40  ;;  %v2091_v30 = vadd.f32 %v668_v5, %v1820_v19 }
 0x28a   :  { %v1478_v41 = vpop.f32.mrf.mxu0 }
 0x28b   :  { %v671_v3 = vadd.f32 %v1478_v41, %v1343_v46  ;;  %v2102_v36 = vadd.f32 %v660_v13, %v1816_v17 }
 0x28c   :  { %v2027_v1 = vpop.f32.mrf.mxu0 }
 0x28d   :  { %v2097_v57 = vadd.f32 %v671_v3, %v1814_v15  ;;  %v738_v41 = vsel %vm280_vm1, %v2102_v36, 0.0 }
 0x28e   :  { %v1481_v10 = vpop.f32.mrf.mxu0 }
 0x28f   :  { %v747_v19 = vsel %vm280_vm1, %v2097_v57, 0.0 }
 0x290   :  { %v675_v43 = vpop.f32.mrf.mxu0 }
 0x291   :  { %v676_v12 = vadd.f32 %v1343_v46, %v675_v43 }
 0x292   :  { %v1482_v44 = vpop.f32.mrf.mxu0 }
 0x293   :  { %v2081_v26 = vadd.f32 %v676_v12, %v1830_v27  ;;  %v663_v27 = vadd.f32 %v1343_v46, %v2027_v1 }
 0x294   :  { %v678_v51 = vpop.f32.mrf.mxu0 }
 0x295   :  { %v679_v23 = vadd.f32 %v1343_v46, %v678_v51  ;;  %v2107_v40 = vadd.f32 %v663_v27, %v1818_v18 }
 0x296   :  { %v1485_v2 = vpop.f32.mrf.mxu0 }
 0x297   :  { %v700_v61 = vadd.f32 %v1485_v2, %v1343_v46  ;;  %v2086_v32 = vadd.f32 %v679_v23, %v1832_v28  ;;  %v744_v28 = vsel %vm280_vm1, %v2091_v30, 0.0  ;;  %v741_v15 = vsel %vm280_vm1, %v2107_v40, 0.0 }
 0x298   :  { %v691_v52 = vpop.f32.mrf.mxu0 }
 0x299   :  { %v753_v33 = vsel %vm280_vm1, %v2086_v32, 0.0 }
 0x29a   :  { %v1486_v59 = vpop.f32.mrf.mxu0 }
 0x29b   :  { %v703_v6 = vadd.f32 %v1486_v59, %v1343_v46 }
 0x29c   :  { %v694_v53 = vpop.f32.mrf.mxu0 }
 0x29d   :  { %v695_v9 = vadd.f32 %v1343_v46, %v694_v53  ;;  %v2056_v14 = vadd.f32 %v703_v6, %v1842_v35 }
 0x29e   :  { %v1489_v34 = vpop.f32.mrf.mxu0 }
 0x29f   :  { %v716_v54 = vadd.f32 %v1489_v34, %v1343_v46  ;;  %v2066_v62 = vadd.f32 %v695_v9, %v1846_v38 }
 0x2a0   :  { %v707_v55 = vpop.f32.mrf.mxu0 }
 0x2a1   :  { %v708_v56 = vadd.f32 %v1343_v46, %v707_v55  ;;  %v2033_v58 = vadd.f32 %v716_v54, %v1862_v49  ;;  %v692_v49 = vadd.f32 %v1343_v46, %v691_v52 }
 0x2a2   :  { %v1490_v60 = vpop.f32.mrf.mxu0 }
 0x2a3   :  { %v719_v63 = vadd.f32 %v1490_v60, %v1343_v46  ;;  %v780_v0 = vsel %vm280_vm1, %v2033_v58, 0.0  ;;  %v2038_v4 = vadd.f32 %v708_v56, %v1858_v47  ;;  %v2051_v47 = vadd.f32 %v700_v61, %v1848_v39 }
 0x2a4   :  { %781 = vadd.xlane.f32.xlu0 %v780_v0  ;;  %v710_v31 = vpop.f32.mrf.mxu0  ;;  %v2061_v21 = vadd.f32 %v692_v49, %v1844_v37  ;;  %v771_v39 = vsel %vm280_vm1, %v2056_v14, 0.0  ;;  %v765_v37 = vsel %vm280_vm1, %v2066_v62, 0.0 }
 0x2a5   :  { %v711_v50 = vadd.f32 %v1343_v46, %v710_v31  ;;  %v774_v7 = vsel %vm280_vm1, %v2038_v4, 0.0  ;;  %v2043_v42 = vadd.f32 %v719_v63, %v1856_v45  ;;  %v684_v45 = vadd.f32 %v1481_v10, %v1343_v46 }
 0x2a6   :  { %775 = vadd.xlane.f32.xlu1 %v774_v7  ;;  %v768_v16 = vsel %vm280_vm1, %v2051_v47, 0.0  ;;  %v762_v35 = vsel %vm280_vm1, %v2061_v21, 0.0 }
 0x2a7   :  { %v783_v8 = vsel %vm280_vm1, %v2043_v42, 0.0  ;;  %v2048_v20 = vadd.f32 %v711_v50, %v1860_v48  ;;  %v687_v48 = vadd.f32 %v1482_v44, %v1343_v46  ;;  %v2071_v22 = vadd.f32 %v684_v45, %v1834_v29 }
 0x2a8   :  { %784 = vadd.xlane.f32.xlu0 %v783_v8 }
 0x2a9   :  { %v777_v11 = vsel %vm280_vm1, %v2048_v20, 0.0  ;;  %v2076_v24 = vadd.f32 %v687_v48, %v1828_v25  ;;  %v756_v38 = vsel %vm280_vm1, %v2071_v22, 0.0  ;;  %v750_v25 = vsel %vm280_vm1, %v2081_v26, 0.0 }
 0x2aa   :  { %778 = vadd.xlane.f32.xlu1 %v777_v11 }
 0x2ab   :  { %v759_v29 = vsel %vm280_vm1, %v2076_v24, 0.0 }
 0x2ac   :  { %769 = vadd.xlane.f32.xlu0 %v768_v16 }
 0x2ae   :  { %772 = vadd.xlane.f32.xlu1 %v771_v39 }
 0x2b0   :  { %763 = vadd.xlane.f32.xlu0 %v762_v35 }
 0x2b2   :  { %766 = vadd.xlane.f32.xlu1 %v765_v37 }
 0x2b4   :  { %757 = vadd.xlane.f32.xlu0 %v756_v38 }
 0x2b6   :  { %760 = vadd.xlane.f32.xlu1 %v759_v29 }
 0x2b8   :  { %751 = vadd.xlane.f32.xlu0 %v750_v25 }
 0x2ba   :  { %754 = vadd.xlane.f32.xlu1 %v753_v33 }
 0x2bc   :  { %745 = vadd.xlane.f32.xlu0 %v744_v28 }
 0x2be   :  { %748 = vadd.xlane.f32.xlu1 %v747_v19 }
 0x2c0   :  { %739 = vadd.xlane.f32.xlu0 %v738_v41 }
 0x2c2   :  { %742 = vadd.xlane.f32.xlu1 %v741_v15 }
 0x32d   :  { %v782_v1 = vpop.xlane.xlu0 %781 }
 0x32e   :  { %v801_v10 = vmul.f32 0.03125, %v782_v1 }
 0x32f   :  { %v776_v17 = vpop.xlane.xlu1 %775 }
 0x330   :  { %v2114_v43 = vsub.f32 %v2033_v58, %v801_v10  ;;  %v799_v44 = vmul.f32 0.03125, %v776_v17 }
 0x331   :  { %v785_v51 = vpop.xlane.xlu0 %784 }
 0x332   :  { %v2117_v18 = vsub.f32 %v2038_v4, %v799_v44  ;;  %v802_v2 = vmul.f32 0.03125, %v785_v51  ;;  %v833_v52 = vmul.f32 %v2114_v43, %v2114_v43 }
 0x333   :  { %v779_v59 = vpop.xlane.xlu1 %778 }
 0x334   :  { %v2122_v53 = vsub.f32 %v2043_v42, %v802_v2  ;;  %v800_v46 = vmul.f32 0.03125, %v779_v59  ;;  %v877_v34 = vsel %vm280_vm1, %v833_v52, 0.0  ;;  %v831_v54 = vmul.f32 %v2117_v18, %v2117_v18 }
 0x335   :  { %v770_v55 = vpop.xlane.xlu0 %769  ;;  %878 = vadd.xlane.f32.xlu0 %v877_v34 }
 0x336   :  { %v2128_v56 = vsub.f32 %v2048_v20, %v800_v46  ;;  %v797_v58 = vmul.f32 0.03125, %v770_v55  ;;  %v834_v60 = vmul.f32 %v2122_v53, %v2122_v53  ;;  %v871_v63 = vsel %vm280_vm1, %v831_v54, 0.0 }
 0x337   :  { %v773_v61 = vpop.xlane.xlu1 %772 }
 0x338   :  { %v2134_v0 = vsub.f32 %v2051_v47, %v797_v58  ;;  %v798_v4 = vmul.f32 0.03125, %v773_v61  ;;  %v880_v31 = vsel %vm280_vm1, %v834_v60, 0.0  ;;  %v832_v6 = vmul.f32 %v2128_v56, %v2128_v56 }
 0x339   :  { %v764_v50 = vpop.xlane.xlu0 %763  ;;  %881 = vadd.xlane.f32.xlu1 %v880_v31  ;;  %872 = vadd.xlane.f32.xlu0 %v871_v63 }
 0x33a   :  { %v2140_v7 = vsub.f32 %v2056_v14, %v798_v4  ;;  %v795_v42 = vmul.f32 0.03125, %v764_v50  ;;  %v829_v49 = vmul.f32 %v2134_v0, %v2134_v0  ;;  %v874_v20 = vsel %vm280_vm1, %v832_v6, 0.0 }
 0x33b   :  { %v767_v8 = vpop.xlane.xlu1 %766 }
 0x33c   :  { %v2146_v47 = vsub.f32 %v2061_v21, %v795_v42  ;;  %v796_v9 = vmul.f32 0.03125, %v767_v8  ;;  %v865_v11 = vsel %vm280_vm1, %v829_v49, 0.0  ;;  %v830_v45 = vmul.f32 %v2140_v7, %v2140_v7 }
 0x33d   :  { %v758_v16 = vpop.xlane.xlu0 %757  ;;  %875 = vadd.xlane.f32.xlu1 %v874_v20  ;;  %866 = vadd.xlane.f32.xlu0 %v865_v11 }
 0x33e   :  { %v2152_v14 = vsub.f32 %v2066_v62, %v796_v9  ;;  %v793_v48 = vmul.f32 0.03125, %v758_v16  ;;  %v827_v39 = vmul.f32 %v2146_v47, %v2146_v47  ;;  %v868_v21 = vsel %vm280_vm1, %v830_v45, 0.0 }
 0x33f   :  { %v761_v12 = vpop.xlane.xlu1 %760 }
 0x340   :  { %v2158_v35 = vsub.f32 %v2071_v22, %v793_v48  ;;  %v794_v23 = vmul.f32 0.03125, %v761_v12  ;;  %v859_v37 = vsel %vm280_vm1, %v827_v39, 0.0  ;;  %v828_v5 = vmul.f32 %v2152_v14, %v2152_v14 }
 0x341   :  { %v752_v38 = vpop.xlane.xlu0 %751  ;;  %869 = vadd.xlane.f32.xlu1 %v868_v21  ;;  %860 = vadd.xlane.f32.xlu0 %v859_v37 }
 0x342   :  { %v2164_v62 = vsub.f32 %v2076_v24, %v794_v23  ;;  %v791_v3 = vmul.f32 0.03125, %v752_v38  ;;  %v825_v29 = vmul.f32 %v2158_v35, %v2158_v35  ;;  %v862_v22 = vsel %vm280_vm1, %v828_v5, 0.0 }
 0x343   :  { %v755_v13 = vpop.xlane.xlu1 %754 }
 0x344   :  { %v2170_v25 = vsub.f32 %v2081_v26, %v791_v3  ;;  %v792_v27 = vmul.f32 0.03125, %v755_v13  ;;  %v853_v33 = vsel %vm280_vm1, %v825_v29, 0.0  ;;  %v826_v28 = vmul.f32 %v2164_v62, %v2164_v62 }
 0x345   :  { %v746_v19 = vpop.xlane.xlu0 %745  ;;  %863 = vadd.xlane.f32.xlu1 %v862_v22  ;;  %854 = vadd.xlane.f32.xlu0 %v853_v33 }
 0x346   :  { %v2176_v24 = vsub.f32 %v2086_v32, %v792_v27  ;;  %v789_v41 = vmul.f32 0.03125, %v746_v19  ;;  %v823_v15 = vmul.f32 %v2170_v25, %v2170_v25  ;;  %v856_v26 = vsel %vm280_vm1, %v826_v28, 0.0  ;;  %v2215_v19 = vld [vmem:[%s2382_s7] ss:$0 sm:$0xff] }
 0x347   :  { %v749_v1 = vpop.xlane.xlu1 %748 }
 0x348   :  { %v2182_v10 = vsub.f32 %v2091_v30, %v789_v41  ;;  %v790_v17 = vmul.f32 0.03125, %v749_v1  ;;  %v847_v44 = vsel %vm280_vm1, %v823_v15, 0.0  ;;  %v824_v51 = vmul.f32 %v2176_v24, %v2176_v24 }
 0x349   :  { %857 = vadd.xlane.f32.xlu1 %v856_v26  ;;  %848 = vadd.xlane.f32.xlu0 %v847_v44  ;;  %v740_v32 = vpop.xlane.xlu0 %739  ;;  %v2221_v44 = vld [vmem:[%s2383_s8] ss:$0 sm:$0xff] }
 0x34a   :  { %v2188_v2 = vsub.f32 %v2097_v57, %v790_v17  ;;  %v787_v52 = vmul.f32 0.03125, %v740_v32  ;;  %v821_v59 = vmul.f32 %v2182_v10, %v2182_v10  ;;  %v850_v30 = vsel %vm280_vm1, %v824_v51, 0.0 }
 0x34b   :  { %v743_v46 = vpop.xlane.xlu1 %742 }
 0x34c   :  { %v2194_v34 = vsub.f32 %v2102_v36, %v787_v52  ;;  %v788_v54 = vmul.f32 0.03125, %v743_v46  ;;  %v841_v55 = vsel %vm280_vm1, %v821_v59, 0.0  ;;  %v822_v58 = vmul.f32 %v2188_v2, %v2188_v2 }
 0x34d   :  { %851 = vadd.xlane.f32.xlu1 %v850_v30  ;;  %842 = vadd.xlane.f32.xlu0 %v841_v55 }
 0x34e   :  { %v2200_v57 = vsub.f32 %v2107_v40, %v788_v54  ;;  %v819_v60 = vmul.f32 %v2194_v34, %v2194_v34  ;;  %v844_v61 = vsel %vm280_vm1, %v822_v58, 0.0  ;;  %v1560_v40 = vld [vmem:[%s2384_s9] sm:$0xff]  }
 0x34f   :  { %1507 = vmatprep.mubr.bf16.mxu1 %v1560_v40 }
 0x350   :  { %v835_v63 = vsel %vm280_vm1, %v819_v60, 0.0  ;;  %v820_v36 = vmul.f32 %v2200_v57, %v2200_v57 }
 0x351   :  { %845 = vadd.xlane.f32.xlu1 %v844_v61  ;;  %836 = vadd.xlane.f32.xlu0 %v835_v63 }
 0x352   :  { %v838_v4 = vsel %vm280_vm1, %v820_v36, 0.0 }
 0x355   :  { %839 = vadd.xlane.f32.xlu1 %v838_v4 }
 0x3be   :  { %v879_v31 = vpop.xlane.xlu0 %878 }
 0x3bf   :  { %v897_v6 = vmul.f32 0.03125, %v879_v31 }
 0x3c1   :  { %v913_v50 = vadd.f32 1e-05, %v897_v6 }
 0x3c2   :  { %v882_v42 = vpop.xlane.xlu1 %881  ;;  %v873_v49 = vpop.xlane.xlu0 %872 }
 0x3c3   :  { %1598 = vrsqrt.f32 %v913_v50  ;;  %v898_v8 = vmul.f32 0.03125, %v882_v42  ;;  %v895_v20 = vmul.f32 0.03125, %v873_v49 }
 0x3c5   :  { %v914_v9 = vadd.f32 1e-05, %v898_v8  ;;  %v911_v11 = vadd.f32 1e-05, %v895_v20 }
 0x3c6   :  { %v876_v45 = vpop.xlane.xlu1 %875  ;;  %v867_v16 = vpop.xlane.xlu0 %866 }
 0x3c7   :  { %1600 = vrsqrt.f32 %v914_v9  ;;  %v896_v48 = vmul.f32 0.03125, %v876_v45  ;;  %v893_v39 = vmul.f32 0.03125, %v867_v16 }
 0x3c8   :  { %1602 = vrsqrt.f32 %v911_v11 }
 0x3c9   :  { %v912_v12 = vadd.f32 1e-05, %v896_v48  ;;  %v909_v21 = vadd.f32 1e-05, %v893_v39 }
 0x3ca   :  { %v870_v23 = vpop.xlane.xlu1 %869  ;;  %v861_v37 = vpop.xlane.xlu0 %860 }
 0x3cb   :  { %1604 = vrsqrt.f32 %v912_v12  ;;  %v894_v5 = vmul.f32 0.03125, %v870_v23  ;;  %v891_v38 = vmul.f32 0.03125, %v861_v37 }
 0x3cc   :  { %1606 = vrsqrt.f32 %v909_v21 }
 0x3cd   :  { %v910_v3 = vadd.f32 1e-05, %v894_v5  ;;  %v907_v29 = vadd.f32 1e-05, %v891_v38 }
 0x3ce   :  { %v864_v13 = vpop.xlane.xlu1 %863  ;;  %v855_v22 = vpop.xlane.xlu0 %854 }
 0x3cf   :  { %1608 = vrsqrt.f32 %v910_v3  ;;  %v892_v27 = vmul.f32 0.03125, %v864_v13  ;;  %v889_v33 = vmul.f32 0.03125, %v855_v22 }
 0x3d0   :  { %v1599_v28 = vpop.eup %1598  ;;  %1610 = vrsqrt.f32 %v907_v29 }
 0x3d1   :  { %v908_v41 = vadd.f32 1e-05, %v892_v27  ;;  %v905_v15 = vadd.f32 1e-05, %v889_v33  ;;  %v945_v1 = vmul.f32 %v1599_v28, %v2114_v43 }
 0x3d2   :  { %v858_v26 = vpop.xlane.xlu1 %857  ;;  %v849_v17 = vpop.xlane.xlu0 %848 }
 0x3d3   :  { %1612 = vrsqrt.f32 %v908_v41  ;;  %v890_v51 = vmul.f32 0.03125, %v858_v26  ;;  %v887_v32 = vmul.f32 0.03125, %v849_v17  ;;  %v968_v52 = vmul.f32 %v2215_v19, %v945_v1 }
 0x3d4   :  { %v1601_v59 = vpop.eup %1600  ;;  %1614 = vrsqrt.f32 %v905_v15 }
 0x3d5   :  { %v1603_v46 = vpop.eup %1602  ;;  %v906_v30 = vadd.f32 1e-05, %v890_v51  ;;  %v903_v54 = vadd.f32 1e-05, %v887_v32  ;;  %v946_v55 = vmul.f32 %v1601_v59, %v2122_v53  ;;  %v991_v43 = vadd.f32 %v2221_v44, %v968_v52 }
 0x3d6   :  { %v852_v58 = vpop.xlane.xlu1 %851  ;;  %v843_v60 = vpop.xlane.xlu0 %842  ;;  %v943_v61 = vmul.f32 %v1603_v46, %v2117_v18 }
 0x3d7   :  { %1616 = vrsqrt.f32 %v906_v30  ;;  %v888_v63 = vmul.f32 0.03125, %v852_v58  ;;  %v885_v36 = vmul.f32 0.03125, %v843_v60  ;;  %v969_v4 = vmul.f32 %v2215_v19, %v946_v55  ;;  %1007 = vst.msk [vmem:[%s2390_s15 + $0x70] sm:$0xff] %vm280_vm1, %v991_v43 }
 0x3d8   :  { %v1605_v40 = vpop.eup %1604  ;;  %1618 = vrsqrt.f32 %v903_v54  ;;  %v966_v53 = vmul.f32 %v2215_v19, %v943_v61 }
 0x3d9   :  { %v1607_v31 = vpop.eup %1606  ;;  %v904_v6 = vadd.f32 1e-05, %v888_v63  ;;  %v901_v50 = vadd.f32 1e-05, %v885_v36  ;;  %v992_v42 = vadd.f32 %v2221_v44, %v969_v4  ;;  %v944_v18 = vmul.f32 %v1605_v40, %v2128_v56 }
 0x3da   :  { %v846_v49 = vpop.xlane.xlu1 %845  ;;  %v837_v8 = vpop.xlane.xlu0 %836  ;;  %v989_v20 = vadd.f32 %v2221_v44, %v966_v53  ;;  %v941_v9 = vmul.f32 %v1607_v31, %v2134_v0 }
 0x3db   :  { %1620 = vrsqrt.f32 %v904_v6  ;;  %v886_v11 = vmul.f32 0.03125, %v846_v49  ;;  %v883_v45 = vmul.f32 0.03125, %v837_v8  ;;  %1008 = vst.msk [vmem:[%s2390_s15 + $0x78] sm:$0xff] %vm280_vm1, %v992_v42  ;;  %v1016_v16 = vpack.c.bf16 %v992_v42, %v991_v43 }
 0x3dc   :  { %v1609_v48 = vpop.eup %1608  ;;  %1622 = vrsqrt.f32 %v901_v50  ;;  %v967_v39 = vmul.f32 %v2215_v19, %v944_v18  ;;  %1005 = vst.msk [vmem:[%s2390_s15 + $0x60] sm:$0xff] %vm280_vm1, %v989_v20  ;;  %v964_v56 = vmul.f32 %v2215_v19, %v941_v9 }
 0x3dd   :  { %v1611_v0 = vpop.eup %1610  ;;  %v902_v12 = vadd.f32 1e-05, %v886_v11  ;;  %v899_v21 = vadd.f32 1e-05, %v883_v45  ;;  %1491 = vmatprep.subr.bf16.mxu1 %v1016_v16  ;;  %v942_v23 = vmul.f32 %v1609_v48, %v2140_v7  ;;  %v1562_v45 = vld [vmem:[%s2385_s10 + $0x8] sm:$0xff]  }
 0x3de   :  { %v840_v37 = vpop.xlane.xlu1 %839  ;;  %1492 = vmatpush3.bf16.msra.mxu1 %v1016_v16  ;;  %v990_v5 = vadd.f32 %v2221_v44, %v967_v39  ;;  %v987_v38 = vadd.f32 %v2221_v44, %v964_v56  ;;  %v939_v3 = vmul.f32 %v1611_v0, %v2146_v47 }
 0x3df   :  { %1624 = vrsqrt.f32 %v902_v12  ;;  %v884_v29 = vmul.f32 0.03125, %v840_v37  ;;  %v965_v13 = vmul.f32 %v2215_v19, %v942_v23  ;;  %v1356_v23 = vld [vmem:[%s2386_s11] ss:$0 sm:$0xff] }
 0x3e0   :  { %v1613_v22 = vpop.eup %1612  ;;  %1626 = vrsqrt.f32 %v899_v21  ;;  %1006 = vst.msk [vmem:[%s2390_s15 + $0x68] sm:$0xff] %vm280_vm1, %v990_v5  ;;  %v1015_v7 = vpack.c.bf16 %v990_v5, %v989_v20  ;;  %1003 = vst.msk [vmem:[%s2390_s15 + $0x50] sm:$0xff] %vm280_vm1, %v987_v38  ;;  %v962_v27 = vmul.f32 %v2215_v19, %v939_v3  ;;  %v1674_v21 = vmov 0.0  }
 0x3e1   :  { %v1615_v47 = vpop.eup %1614  ;;  %v900_v33 = vadd.f32 1e-05, %v884_v29  ;;  %v988_v28 = vadd.f32 %v2221_v44, %v965_v13  ;;  %v940_v41 = vmul.f32 %v1613_v22, %v2152_v14 }
 0x3e2   :  { %1493 = vmatprep.subr.bf16.mxu1 %v1015_v7  ;;  %v985_v15 = vadd.f32 %v2221_v44, %v962_v27  ;;  %v937_v1 = vmul.f32 %v1615_v47, %v2158_v35 }
 0x3e3   :  { %1628 = vrsqrt.f32 %v900_v33  ;;  %1494 = vmatpush3.bf16.msra.mxu1 %v1015_v7  ;;  %1004 = vst.msk [vmem:[%s2390_s15 + $0x58] sm:$0xff] %vm280_vm1, %v988_v28  ;;  %v1014_v26 = vpack.c.bf16 %v988_v28, %v987_v38  ;;  %v963_v17 = vmul.f32 %v2215_v19, %v940_v41  ;;  %v1166_v33 = vld [vmem:[%s2387_s12] sm:$0xf]  ;;  %v1564_v28 = vld [vmem:[%s2388_s13 + $0x8] sm:$0xff]   ;;  %s1676_s12 = smov [#allocation2]  }
 0x3e4   :  { %v1617_v51 = vpop.eup %1616  ;;  %1001 = vst.msk [vmem:[%s2390_s15 + $0x40] sm:$0xff] %vm280_vm1, %v985_v15  ;;  %v960_v14 = vmul.f32 %v2215_v19, %v937_v1  ;;  %v1565_v41 = vld [vmem:[%s2388_s13] sm:$0xff]   ;;  %s1287_s22 = sshll.u32 %s1676_s12, 4  ;;  %s1288_s22 = int_to_ptr.vmem [resolvable:$true] %s1287_s22 }
 0x3e5   :  { %v1619_v32 = vpop.eup %1618  ;;  %1495 = vmatprep.subr.bf16.mxu1 %v1014_v26  ;;  %v986_v35 = vadd.f32 %v2221_v44, %v963_v17  ;;  %v938_v52 = vmul.f32 %v1617_v51, %v2164_v62  ;;  %s1630_s23 = scalar_lea.vmem %s1288_s22, 512  ;;  %p1635_p1 = scmp.lt.s32.totalorder %s1288_s22, %s1288_s22 }
 0x3e6   :  { %v983_v59 = vadd.f32 %v2221_v44, %v960_v14  ;;  %v935_v46 = vmul.f32 %v1619_v32, %v2170_v25  ;;  %p1631_p0 = scmp.ne.s32.totalorder %s1288_s22, %s1630_s23  ;;  %p1636_p2 = scmp.lt.s32.totalorder %s1630_s23, %s1630_s23 }
 0x3e7   :  { %1496 = vmatpush3.bf16.msra.mxu1 %v1014_v26  ;;  %1002 = vst.msk [vmem:[%s2390_s15 + $0x48] sm:$0xff] %vm280_vm1, %v986_v35  ;;  %v1013_v30 = vpack.c.bf16 %v986_v35, %v985_v15  ;;  %v961_v54 = vmul.f32 %v2215_v19, %v938_v52 }
 0x3e8   :  { %v1621_v55 = vpop.eup %1620  ;;  %999 = vst.msk [vmem:[%s2390_s15 + $0x30] sm:$0xff] %vm280_vm1, %v983_v59  ;;  %v958_v62 = vmul.f32 %v2215_v19, %v935_v46  ;;  %p1637_p3 = por %p1636_p2, %p1635_p1 }
 0x3e9   :  { %v1623_v43 = vpop.eup %1622  ;;  %1497 = vmatprep.subr.bf16.mxu1 %v1013_v30  ;;  %v984_v25 = vadd.f32 %v2221_v44, %v961_v54  ;;  %v936_v58 = vmul.f32 %v1621_v55, %v2176_v24 }
 0x3ea   :  { %v981_v60 = vadd.f32 %v2221_v44, %v958_v62  ;;  %v933_v61 = vmul.f32 %v1623_v43, %v2182_v10  ;;  %p1638_p4 = pnand %p1637_p3, %p1631_p0 }
 0x3eb   :  { %1498 = vmatpush3.bf16.msra.mxu1 %v1013_v30  ;;  %1000 = vst.msk [vmem:[%s2390_s15 + $0x38] sm:$0xff] %vm280_vm1, %v984_v25  ;;  %v1012_v63 = vpack.c.bf16 %v984_v25, %v983_v59  ;;  %v959_v36 = vmul.f32 %v2215_v19, %v936_v58 }
 0x3ec   :  { %v1625_v4 = vpop.eup %1624  ;;  %997 = vst.msk [vmem:[%s2390_s15 + $0x20] sm:$0xff] %vm280_vm1, %v981_v60  ;;  %v956_v24 = vmul.f32 %v2215_v19, %v933_v61 }
 0x3ed   :  { %v1627_v40 = vpop.eup %1626  ;;  %1499 = vmatprep.subr.bf16.mxu1 %v1012_v63  ;;  %v982_v10 = vadd.f32 %v2221_v44, %v959_v36  ;;  %v934_v53 = vmul.f32 %v1625_v4, %v2188_v2 }
 0x3ee   :  { %v979_v31 = vadd.f32 %v2221_v44, %v956_v24  ;;  %v931_v6 = vmul.f32 %v1627_v40, %v2194_v34 }
 0x3ef   :  { %1500 = vmatpush3.bf16.msra.mxu1 %v1012_v63  ;;  %998 = vst.msk [vmem:[%s2390_s15 + $0x28] sm:$0xff] %vm280_vm1, %v982_v10  ;;  %v1011_v50 = vpack.c.bf16 %v982_v10, %v981_v60  ;;  %v957_v42 = vmul.f32 %v2215_v19, %v934_v53 }
 0x3f0   :  { %v1629_v18 = vpop.eup %1628  ;;  %995 = vst.msk [vmem:[%s2390_s15 + $0x10] sm:$0xff] %vm280_vm1, %v979_v31  ;;  %v954_v2 = vmul.f32 %v2215_v19, %v931_v6 }
 0x3f1   :  { %1501 = vmatprep.subr.bf16.mxu1 %v1011_v50  ;;  %v980_v34 = vadd.f32 %v2221_v44, %v957_v42  ;;  %v932_v49 = vmul.f32 %v1629_v18, %v2200_v57 }
 0x3f2   :  { %v977_v8 = vadd.f32 %v2221_v44, %v954_v2 }
 0x3f3   :  { %1502 = vmatpush3.bf16.msra.mxu1 %v1011_v50  ;;  %996 = vst.msk [vmem:[%s2390_s15 + $0x18] sm:$0xff] %vm280_vm1, %v980_v34  ;;  %v1010_v20 = vpack.c.bf16 %v980_v34, %v979_v31  ;;  %v955_v9 = vmul.f32 %v2215_v19, %v932_v49  ;;  %v1561_v19 = vld [vmem:[%s2384_s9 + $0x8] sm:$0xff]  }
 0x3f4   :  { %993 = vst.msk [vmem:[%s2390_s15] sm:$0xff] %vm280_vm1, %v977_v8 }
 0x3f5   :  { %1503 = vmatprep.subr.bf16.mxu1 %v1010_v20  ;;  %v978_v11 = vadd.f32 %v2221_v44, %v955_v9  ;;  %v1563_v44 = vld [vmem:[%s2385_s10] sm:$0xff]  }
 0x3f7   :  { %1504 = vmatpush3.bf16.msra.mxu1 %v1010_v20  ;;  %994 = vst.msk [vmem:[%s2390_s15 + $0x8] sm:$0xff] %vm280_vm1, %v978_v11  ;;  %v1009_v57 = vpack.c.bf16 %v978_v11, %v977_v8 }
 0x3f9   :  { %1505 = vmatprep.subr.bf16.mxu1 %v1009_v57 }
 0x3fb   :  { %1506 = vmatpush3.bf16.msra.mxu1 %v1009_v57 }
 0x3fc   :  { %1511 = vmatprep.subr.bf16.mxu1 %v1562_v45 }
 0x3fe   :  { %1508 = vmatmul.mubr.bf16.vlgmr.msra.gmra.mxu1 %v1561_v19 }
 0x3ff   :  { %1512 = vmatpush3.bf16.msra.mxu1 %v1562_v45 }
 0x400   :  { %1513 = vmatprep.subr.bf16.mxu1 %v1563_v44 }
 0x403   :  { %1514 = vmatpush3.bf16.msra.mxu1 %v1563_v44 }
 0x404   :  { %1519 = vmatprep.subr.bf16.mxu1 %v1674_v21 }
 0x4be   :  { %v1509_v16 = vpop.f32.mrf.mxu1 }
 0x4c0   :  { %v1067_v48 = vpop.f32.mrf.mxu1 }
 0x4c2   :  { %v1510_v39 = vpop.f32.mrf.mxu1 }
 0x4c3   :  { %v1083_v12 = vpack.c.bf16 %v1510_v39, %v1509_v16 }
 0x4c4   :  { %v1070_v56 = vpop.f32.mrf.mxu1 }
 0x4c5   :  { %v1082_v0 = vpack.c.bf16 %v1070_v56, %v1067_v48 }
 0x4c7   :  { %1515 = vmatprep.mubr.msk.bf16.mxu1 %vm280_vm1, %v1082_v0 }
 0x4c8   :  { %1516 = vmatmul.mubr.msk.bf16.vlgmr.msra.gmra.mxu1 %vm280_vm1, %v1083_v12 }
 0x4c9   :  { %1523 = vmatprep.mubr.msk.bf16.mxu1 %vm1675_vm2, %v1674_v21 }
 0x588   :  { %v1517_v37 = vpop.f32.mrf.mxu1 }
 0x589   :  { %v1156_v5 = vadd.f32 %v1517_v37, %v1356_v23 }
 0x58a   :  { %v1147_v38 = vpop.f32.mrf.mxu1 }
 0x58b   :  { %1164 = vst.msk [vmem:[#allocation2 + $0x10] sm:$0xff] %vm280_vm1, %v1156_v5  ;;  %v1148_v3 = vadd.f32 %v1356_v23, %v1147_v38 }
 0x58c   :  { %v1518_v29 = vpop.f32.mrf.mxu1 }
 0x58d   :  { %1162 = vst.msk [vmem:[#allocation2] sm:$0xff] %vm280_vm1, %v1148_v3  ;;  %v1159_v13 = vadd.f32 %v1518_v29, %v1356_v23 }
 0x58e   :  { %v1150_v22 = vpop.f32.mrf.mxu1 }
 0x58f   :  { %1165 = vst.msk [vmem:[#allocation2 + $0x18] sm:$0xff] %vm280_vm1, %v1159_v13  ;;  %v1168_v7 = vpack.c.bf16 %v1159_v13, %v1156_v5  ;;  %v1151_v27 = vadd.f32 %v1356_v23, %v1150_v22 }
 0x591   :  { %1163 = vst.msk [vmem:[#allocation2 + $0x8] sm:$0xff] %vm280_vm1, %v1151_v27  ;;  %1520 = vmatpush3.bf16.msra.mxu1 %v1168_v7  ;;  %v1167_v47 = vpack.c.bf16 %v1151_v27, %v1148_v3 }
 0x592   :  { %1521 = vmatprep.subr.bf16.mxu1 %v1674_v21 }
 0x595   :  { %1522 = vmatpush3.bf16.msra.mxu1 %v1167_v47 }
 0x596   :  { %1527 = vmatprep.subr.bf16.mxu1 %v1674_v21 }
 0x598   :  { %1524 = vmatmul.mubr.msk.bf16.vlgmr.msra.gmra.mxu1 %vm280_vm1, %v1166_v33 }
 0x599   :  { %1528 = vmatpush3.bf16.msra.mxu1 %v1564_v28  ;;  %1531 = vmatprep.mubr.msk.bf16.mxu1 %vm1675_vm2, %v1674_v21 }
 0x59a   :  { %1529 = vmatprep.subr.bf16.mxu1 %v1674_v21 }
 0x59d   :  { %1530 = vmatpush3.bf16.msra.mxu1 %v1565_v41 }
 0x658   :  { %v1206_v15 = vpop.f32.mrf.mxu1 }
 0x659   :  { %v1212_v1 = vpack.c.bf16 %v1206_v15, %v1206_v15 }
 0x65a   :  { %v1525_v26 = vpop.f32.mrf.mxu1 }
 0x65b   :  { %1532 = vmatmul.mubr.msk.bf16.vlgmr.msra.gmra.mxu1 %vm280_vm1, %v1212_v1 }
 0x65c   :  { %v1209_v17 = vpop.f32.mrf.mxu1 }
 0x65e   :  { %v1526_v51 = vpop.f32.mrf.mxu1 }
 0x65f   :  { %1641 = shalt.err (!%p1638_p4)
}
 0x660   :  { %s1677_s7 = smov 128   ;;  %s1678_s13 = smov 8   ;;  %v1362_v14 = vld [vmem:[%s2389_s14] ss:$0 sm:$0xff] }
 0x661   :  { %1293 = dma.vmem_to_hbm [thread:$0]  %s1288_s22, 512, %s2391_s16, [#allocation3], %s1677_s7, %s1677_s7, %s1678_s13  }
 0x662   :  { %s1679_s27 = smov [#allocation4]  }
 0x663   :  { %s1300_s28 = sshll.u32 %s1679_s27, 4  ;;  %s1301_s28 = int_to_ptr.vmem [resolvable:$true] %s1300_s28 }
 0x664   :  { %s1650_s0 = scalar_lea.vmem %s1301_s28, 128  ;;  %p1655_p6 = scmp.lt.s32.totalorder %s1301_s28, %s1301_s28 }
 0x665   :  { %p1651_p5 = scmp.ne.s32.totalorder %s1301_s28, %s1650_s0  ;;  %p1656_p7 = scmp.lt.s32.totalorder %s1650_s0, %s1650_s0 }
 0x667   :  { %p1657_p8 = por %p1656_p7, %p1655_p6 }
 0x669   :  { %p1658_p9 = pnand %p1657_p8, %p1651_p5 }
 0x71b   :  { %v1273_v32 = vpop.f32.mrf.mxu1 }
 0x71c   :  { %v1274_v35 = vadd.f32 %v1362_v14, %v1273_v32 }
 0x71d   :  { %v1533_v52 = vpop.f32.mrf.mxu1 }
 0x71e   :  { %1279 = vst.msk [vmem:[#allocation4] sm:$0xff] %vm280_vm1, %v1274_v35 }
 0x71f   :  { %v1276_v59 = vpop.f32.mrf.mxu1 }
 0x720   :  { %1661 = shalt.err (!%p1658_p9)
}
 0x721   :  { %1303 = dma.vmem_to_hbm [thread:$0]  %s1301_s28, 128, %s2392_s17, [#allocation5]   ;;  %v1534_v46 = vpop.f32.mrf.mxu1 }
 0x722   :  { %1670 = dma.done.wait [#allocation3], 512  }
 0x723   :  { %1671 = vsyncadd [#allocation3], 4294966784 }
 0x724   :  { %1672 = dma.done.wait [#allocation5], 128  }
 0x725   :  { %1673 = vsyncadd [#allocation5], 4294967168 }
 0x726   :  { %1312 = vsyncpa [#allocation3], 1 }
 0x727   :  { %1313 = vsyncpa [#allocation5], 1 }

</bundles_post_ra>
